<compile_context>
chip_gen: v5e
topology: v5e:2x2
jax: 0.10.0
libtpu: 0.0.40
codegen_flags: <defaults>
</compile_context>

<pallas_src>
import functools

import jax
import jax.numpy as jnp
from jax import lax
from jax.experimental import pallas as pl
from jax.experimental.pallas import tpu as pltpu


# ----------------------------- kernels ------------------------------------ #

def _conv_lhs(x_ref):
    """Folded-K LHS for the (1,3,3) conv.

    x_ref: (F, H+2, (W+2)*Ci) frames with both halos already zero-padded.
    Returns (F*H, 3*(W+2)*Ci): the three vertical taps concatenated along the
    contraction (lane) dim so the conv is a single MXU dot per block.
    """
    F, Hp, X = x_ref.shape
    H = Hp - 2
    taps = [x_ref[:, dy:dy + H, :].reshape(F * H, X) for dy in range(3)]
    return jnp.concatenate(taps, axis=-1)


def _conv_stats_kernel(x_ref, w_ref, s1_ref, s2_ref):
    # Stats-only pass: conv result is produced on the MXU but never written to
    # HBM; only per-frame column sums / sums-of-squares leave the kernel.
    # x_ref : (F, H+2, (W+2)*Ci)    padded frames, channels-last
    # w_ref : (3*(W+2)*Ci, W*Co)    banded conv weight, columns = (w, co)
    # s1/s2 : (F, 1, W*Co)          per-frame partial GroupNorm statistics
    F = x_ref.shape[0]
    H = x_ref.shape[1] - 2
    y = jnp.dot(_conv_lhs(x_ref), w_ref[...],
                preferred_element_type=jnp.float32)
    y = y.reshape(F, H, y.shape[-1])
    s1_ref[...] = jnp.sum(y, axis=1, keepdims=True)
    s2_ref[...] = jnp.sum(y * y, axis=1, keepdims=True)


def _conv_norm_act_kernel(x_ref, w_ref, a_ref, b_ref, o_ref):
    # Fused pass: recompute conv, apply the combined per-(batch,channel) affine
    # (GroupNorm * gamma/beta * (scale+1) + shift, conv bias folded in) + SiLU.
    # a_ref/b_ref: (F, 1, W*Co) per-frame affine; o_ref: (F, H, W*Co).
    F = x_ref.shape[0]
    H = x_ref.shape[1] - 2
    y = jnp.dot(_conv_lhs(x_ref), w_ref[...],
                preferred_element_type=jnp.float32)
    y = y.reshape(F, H, y.shape[-1])
    z = y * a_ref[...] + b_ref[...]
    o_ref[...] = z * jax.nn.sigmoid(z)                 # SiLU


# ----------------------------- helpers ------------------------------------ #

def _banded_conv_weight(weight, W, dtype):
    """(Co, Ci, 1, 3, 3) conv weight -> (3*(W+2)*Ci, W*Co) banded matrix.

    Rows are ordered (dy, u, ci) to match the in-kernel LHS (three vertically
    shifted slices concatenated along the contraction dim); columns are (w, co)
    pairs so the MXU result is lane-dense without any relayout.
    """
    Co, Ci = weight.shape[0], weight.shape[1]
    w5 = jnp.transpose(weight[:, :, 0, :, :], (2, 3, 1, 0))   # (dy, dx, Ci, Co)
    u = jnp.arange(W + 2)[:, None]                            # padded column
    wc = jnp.arange(W)[None, :]                               # output column
    dx = u - wc                                               # (W+2, W)
    valid = ((dx >= 0) & (dx <= 2)).astype(w5.dtype)
    dxc = jnp.clip(dx, 0, 2)
    band = w5[:, dxc, :, :] * valid[None, :, :, None, None]   # (3, W+2, W, Ci, Co)
    band = jnp.transpose(band, (0, 1, 3, 2, 4))               # (3, W+2, Ci, W, Co)
    return band.reshape(3 * (W + 2) * Ci, W * Co).astype(dtype)


def _tpu_vmem_bytes():
    """Physical VMEM per core; conservative fallback (v7x = 64 MiB)."""
    try:
        info = pltpu.get_tpu_info()
        vmem = int(getattr(info, "vmem_capacity_bytes", 0))
        if vmem > 0:
            return vmem
    except Exception:
        pass
    return 64 * 1024 * 1024


def _num_tensorcores():
    """2 for megacore / dual-TC parts (v4 / v5p / v7x), else 1."""
    try:
        kind = jax.devices()[0].device_kind.lower()
    except Exception:
        return 1
    return 2 if any(t in kind for t in ("v4", "v5p", "v7")) else 1


def _pick_frames(num_frames, frame_bytes, budget, min_steps):
    """Largest frame fold F dividing num_frames that fits the VMEM budget.

    On multi-TensorCore parts, prefer F that keeps >= min_steps grid steps
    (>= 2 per core, so each core still pipelines DMA); single-TC parts simply
    take the largest fitting F.
    """
    cands = [f for f in range(1, num_frames + 1)
             if num_frames % f == 0 and f * frame_bytes <= budget]
    if not cands:
        # TODO(synk): tile H inside a frame when a single frame exceeds VMEM.
        return 1
    if min_steps > 1:
        pref = [f for f in cands if num_frames // f >= min_steps]
        if pref:
            return max(pref)
    return max(cands)


# ----------------------------- wrapper ------------------------------------ #

@functools.partial(jax.jit, static_argnames=("groups", "eps", "use_bf16"))
def block_forward(x_ncdhw, weight, bias, gamma, beta, scale=None, shift=None,
                  *, groups=8, eps=1e-5, use_bf16=False):
    """Forward pass of Block. x_ncdhw: (N, Ci, D, H, W) -> (N, Co, D, H, W)."""
    N, Ci, D, H, W = x_ncdhw.shape
    Co = weight.shape[0]
    G = groups
    cpg = Co // G
    ND = N * D
    Wp = W + 2
    WCo = W * Co          # lane-dense output columns when W*Co % 128 == 0
    K3 = 3 * Wp * Ci
    mxu_dtype = jnp.bfloat16 if use_bf16 else jnp.float32
    bytes_x = 2 if use_bf16 else 4

    # --- layout prep: one XLA pass over the small Ci-wide input. NCDHW ->
    #     channels-last frames; BOTH the W and H conv halos come from this one
    #     jnp.pad, so the kernels need no VMEM scratch / halo zeroing.
    #     bf16 path: cast once here (halves input DMA; no in-kernel casts).
    xf = jnp.transpose(x_ncdhw, (0, 2, 3, 4, 1)).astype(mxu_dtype)
    xf = jnp.pad(xf, ((0, 0), (0, 0), (1, 1), (1, 1), (0, 0)))
    xf = xf.reshape(ND, H + 2, Wp * Ci)

    wb = _banded_conv_weight(weight.astype(jnp.float32), W, mxu_dtype)

    # --- generation-aware tile sizing (v7x: 64 MiB VMEM, 2 TCs need >=4
    #     steps; v5e/v6e: single TC, use the largest F that fits).
    frame_bytes = (2 * (H + 2) * Wp * Ci * bytes_x   # input block (x2 buffers)
                   + H * K3 * bytes_x                # folded-K LHS temp
                   + 3 * H * WCo * 4                 # f32 conv tile + temps
                   + 2 * H * WCo * 4)                # output block (x2 buffers)
    vmem_limit = min((_tpu_vmem_bytes() * 3) // 4, 96 * 1024 * 1024)
    weight_bytes = K3 * WCo * bytes_x                # resident every step
    budget = max(vmem_limit // 2 - 2 * weight_bytes, frame_bytes)
    min_steps = 4 if _num_tensorcores() >= 2 else 1
    F = _pick_frames(ND, frame_bytes, budget, min_steps)
    steps = ND // F

    cparams = pltpu.CompilerParams(dimension_semantics=("parallel",),
                                   vmem_limit_bytes=vmem_limit)

    # --- pass 1: stats only (conv recomputed later, never stored in HBM).
    s1, s2 = pl.pallas_call(
        _conv_stats_kernel,
        out_shape=(jax.ShapeDtypeStruct((ND, 1, WCo), jnp.float32),
                   jax.ShapeDtypeStruct((ND, 1, WCo), jnp.float32)),
        grid=(steps,),
        in_specs=[
            pl.BlockSpec((F, H + 2, Wp * Ci), lambda i: (i, 0, 0)),
            pl.BlockSpec((K3, WCo), lambda i: (0, 0)),
        ],
        out_specs=(
            pl.BlockSpec((F, 1, WCo), lambda i: (i, 0, 0)),
            pl.BlockSpec((F, 1, WCo), lambda i: (i, 0, 0)),
        ),
        compiler_params=cparams,
    )(xf, wb)

    # --- tiny XLA glue: fold per-frame stats, the conv bias (exactly, incl.
    #     its effect on mean/variance), GroupNorm gamma/beta and the optional
    #     scale/shift into one per-(batch,channel) affine A*y + B.
    cnt_c = float(D * H * W)
    s1c = s1.reshape(N, D, W, Co).sum(axis=(1, 2))          # (N, Co) sum y
    s2c = s2.reshape(N, D, W, Co).sum(axis=(1, 2))          # (N, Co) sum y^2
    b = bias.reshape(1, Co).astype(jnp.float32)
    s1b = s1c + b * cnt_c                                   # sums of (y + bias)
    s2b = s2c + 2.0 * b * s1c + b * b * cnt_c
    cnt_g = cnt_c * cpg
    g_sum = s1b.reshape(N, G, cpg).sum(axis=-1)             # (N, G)
    g_sq = s2b.reshape(N, G, cpg).sum(axis=-1)
    mean_g = g_sum / cnt_g
    # NOTE: E[x^2]-E[x]^2 in f32 can cancel for huge groups with large means;
    # the clamp prevents NaN (bias is folded exactly, in f32, at tiny count).
    var_g = jnp.maximum(g_sq / cnt_g - mean_g * mean_g, 0.0)
    inv_g = lax.rsqrt(var_g + eps)
    mean_c = jnp.repeat(mean_g, cpg, axis=1)                # (N, Co)
    inv_c = jnp.repeat(inv_g, cpg, axis=1)

    if scale is None:
        scale = jnp.zeros((N, Co), jnp.float32)
    if shift is None:
        shift = jnp.zeros((N, Co), jnp.float32)
    scale = scale.reshape(N, Co).astype(jnp.float32)
    shift = shift.reshape(N, Co).astype(jnp.float32)

    gi = gamma.reshape(1, Co).astype(jnp.float32) * inv_c
    sp1 = scale + 1.0
    a_nc = gi * sp1                                         # (N, Co)
    b_nc = ((b - mean_c) * gi + beta.reshape(1, Co).astype(jnp.float32)) \
        * sp1 + shift
    a_f = jnp.repeat(jnp.tile(a_nc, (1, W)), D, axis=0).reshape(ND, 1, WCo)
    b_f = jnp.repeat(jnp.tile(b_nc, (1, W)), D, axis=0).reshape(ND, 1, WCo)

    # --- pass 2: fused conv + affine + SiLU, single HBM write of the result.
    out = pl.pallas_call(
        _conv_norm_act_kernel,
        out_shape=jax.ShapeDtypeStruct((ND, H, WCo), jnp.float32),
        grid=(steps,),
        in_specs=[
            pl.BlockSpec((F, H + 2, Wp * Ci), lambda i: (i, 0, 0)),
            pl.BlockSpec((K3, WCo), lambda i: (0, 0)),
            pl.BlockSpec((F, 1, WCo), lambda i: (i, 0, 0)),
            pl.BlockSpec((F, 1, WCo), lambda i: (i, 0, 0)),
        ],
        out_specs=pl.BlockSpec((F, H, WCo), lambda i: (i, 0, 0)),
        compiler_params=cparams,
    )(xf, wb, a_f, b_f)

    # channels-last rows -> NCDHW (PyTorch convention).
    # TODO(synk): the final NCDHW transpose stays in XLA; emitting it straight
    # from the kernel's out_spec would need an in-kernel (w,co)->channel-major
    # relayout (and W lanes alone are too narrow to be lane-dense).
    out = out.reshape(N, D, H, W, Co)
    return jnp.transpose(out, (0, 4, 1, 2, 3))


# --------------------------- pure-JAX reference ---------------------------- #

def block_reference(x, weight, bias, gamma, beta, scale, shift,
                    groups=8, eps=1e-5):
    out = lax.conv_general_dilated(
        x, weight, window_strides=(1, 1, 1),
        padding=((0, 0), (1, 1), (1, 1)),
        dimension_numbers=("NCDHW", "OIDHW", "NCDHW"))
    out = out + bias[None, :, None, None, None]
    N, C, D, H, W = out.shape
    g = out.reshape(N, groups, (C // groups) * D * H * W)
    mean = g.mean(axis=-1, keepdims=True)
    var = g.var(axis=-1, keepdims=True)
    g = (g - mean) / jnp.sqrt(var + eps)
    out = g.reshape(N, C, D, H, W)
    out = out * gamma[None, :, None, None, None] + beta[None, :, None, None, None]
    out = out * (scale[:, :, None, None, None] + 1.0) + shift[:, :, None, None, None]
    return out * jax.nn.sigmoid(out)


# ------------------------------- main -------------------------------------- #

if __name__ == "__main__":
    N, Ci, Co, D, H, W, G = 2, 4, 16, 3, 8, 8, 8
    key = jax.random.PRNGKey(0)
    ks = jax.random.split(key, 7)

    x = jax.random.normal(ks[0], (N, Ci, D, H, W), jnp.float32)
    weight = 0.1 * jax.random.normal(ks[1], (Co, Ci, 1, 3, 3), jnp.float32)
    bias = 0.1 * jax.random.normal(ks[2], (Co,), jnp.float32)
    gamma = 1.0 + 0.1 * jax.random.normal(ks[3], (Co,), jnp.float32)
    beta = 0.1 * jax.random.normal(ks[4], (Co,), jnp.float32)
    scale = 0.1 * jax.random.normal(ks[5], (N, Co), jnp.float32)
    shift = 0.1 * jax.random.normal(ks[6], (N, Co), jnp.float32)

    ref = block_reference(x, weight, bias, gamma, beta, scale, shift, groups=G)

    # f32 path (strict tolerance).
    out = block_forward(x, weight, bias, gamma, beta, scale, shift, groups=G)
    out = jax.block_until_ready(out)
    assert out.shape == (N, Co, D, H, W)
    max_err = float(jnp.max(jnp.abs(out - ref)))
    if not jnp.allclose(out, ref, atol=2e-3, rtol=2e-3):
        raise AssertionError(f"f32 mismatch vs reference, max abs err = {max_err:e}")

    # bf16 MXU-operand path (v6e/v7x perf item), f32 accumulation, looser tol.
    out_bf16 = block_forward(x, weight, bias, gamma, beta, scale, shift,
                             groups=G, use_bf16=True)
    out_bf16 = jax.block_until_ready(out_bf16)
    max_err_bf16 = float(jnp.max(jnp.abs(out_bf16 - ref)))
    if not jnp.allclose(out_bf16, ref, atol=5e-2, rtol=5e-2):
        raise AssertionError(
            f"bf16 mismatch vs reference, max abs err = {max_err_bf16:e}")

    print("KERNEL_OK")
</pallas_src>

<mosaic_0001>
module attributes {stable_mosaic.version = 11 : i64} {
  func.func @_conv_stats_kernel(%arg0: i32, %arg1: memref<6x10x40xf32, #tpu.memory_space<vmem>>, %arg2: memref<120x128xf32, #tpu.memory_space<vmem>>, %arg3: memref<6x1x128xf32, #tpu.memory_space<vmem>>, %arg4: memref<6x1x128xf32, #tpu.memory_space<vmem>>) attributes {dimension_semantics = [#tpu.dimension_semantics<parallel>], iteration_bounds = array<i64: 1>, scalar_prefetch = 0 : i64, scratch_operands = 0 : i64, tpu.core_type = #tpu.core_type<tc>, window_params = [{transform_indices = @transform_0, window_bounds = array<i64: 6, 10, 40>}, {pipeline_mode = #tpu.pipeline_mode<synchronous>, transform_indices = @transform_1, window_bounds = array<i64: 120, 128>}, {transform_indices = @transform_2, window_bounds = array<i64: 6, 1, 128>}, {transform_indices = @transform_3, window_bounds = array<i64: 6, 1, 128>}]} {
    %c0 = arith.constant 0 : index
    %c0_0 = arith.constant 0 : index
    %c0_1 = arith.constant 0 : index
    %0 = vector.load %arg1[%c0, %c0_0, %c0_1] : memref<6x10x40xf32, #tpu.memory_space<vmem>>, vector<6x8x40xf32>
    %1 = vector.shape_cast %0 : vector<6x8x40xf32> to vector<48x40xf32>
    %c0_2 = arith.constant 0 : index
    %c1 = arith.constant 1 : index
    %c0_3 = arith.constant 0 : index
    %2 = vector.load %arg1[%c0_2, %c1, %c0_3] : memref<6x10x40xf32, #tpu.memory_space<vmem>>, vector<6x8x40xf32>
    %3 = vector.shape_cast %2 : vector<6x8x40xf32> to vector<48x40xf32>
    %c0_4 = arith.constant 0 : index
    %c2 = arith.constant 2 : index
    %c0_5 = arith.constant 0 : index
    %4 = vector.load %arg1[%c0_4, %c2, %c0_5] : memref<6x10x40xf32, #tpu.memory_space<vmem>>, vector<6x8x40xf32>
    %5 = vector.shape_cast %4 : vector<6x8x40xf32> to vector<48x40xf32>
    %6 = tpu.concatenate %1, %3, %5 in 1 : vector<48x40xf32>, vector<48x40xf32>, vector<48x40xf32> -> vector<48x120xf32>
    %c0_6 = arith.constant 0 : index
    %c0_7 = arith.constant 0 : index
    %7 = vector.load %arg2[%c0_6, %c0_7] : memref<120x128xf32, #tpu.memory_space<vmem>>, vector<120x128xf32>
    %cst = arith.constant dense<0.000000e+00> : vector<48x128xf32>
    %8 = tpu.matmul %6, %7, %cst {dimension_numbers = #tpu.dot_dimension_numbers<[1], [0], [0], [1], [0, 0, 1, 1], [], []>} : vector<48x120xf32>, vector<120x128xf32>, vector<48x128xf32> -> vector<48x128xf32>
    %9 = vector.shape_cast %8 : vector<48x128xf32> to vector<6x8x128xf32>
    %cst_8 = arith.constant dense<0.000000e+00> : vector<6x128xf32>
    %10 = vector.multi_reduction <add>, %9, %cst_8 [1] : vector<6x8x128xf32> to vector<6x128xf32>
    %11 = vector.shape_cast %10 : vector<6x128xf32> to vector<6x1x128xf32>
    %c0_9 = arith.constant 0 : index
    %c0_10 = arith.constant 0 : index
    %c0_11 = arith.constant 0 : index
    %12 = vector.load %arg3[%c0_9, %c0_10, %c0_11] : memref<6x1x128xf32, #tpu.memory_space<vmem>>, vector<6x1x128xf32>
    tpu.vector_store %arg3[%c0_9, %c0_10, %c0_11], %11 {strides = array<i32>} : memref<6x1x128xf32, #tpu.memory_space<vmem>>, vector<6x1x128xf32>,
    %13 = arith.mulf %9, %9 : vector<6x8x128xf32>
    %cst_12 = arith.constant dense<0.000000e+00> : vector<6x128xf32>
    %14 = vector.multi_reduction <add>, %13, %cst_12 [1] : vector<6x8x128xf32> to vector<6x128xf32>
    %15 = vector.shape_cast %14 : vector<6x128xf32> to vector<6x1x128xf32>
    %c0_13 = arith.constant 0 : index
    %c0_14 = arith.constant 0 : index
    %c0_15 = arith.constant 0 : index
    %16 = vector.load %arg4[%c0_13, %c0_14, %c0_15] : memref<6x1x128xf32, #tpu.memory_space<vmem>>, vector<6x1x128xf32>
    tpu.vector_store %arg4[%c0_13, %c0_14, %c0_15], %15 {strides = array<i32>} : memref<6x1x128xf32, #tpu.memory_space<vmem>>, vector<6x1x128xf32>,
    return
  }
  func.func @transform_0(%arg0: i32) -> (i32, i32, i32) {
    %c0_i32 = arith.constant 0 : i32
    %c0_i32_0 = arith.constant 0 : i32
    %c0_i32_1 = arith.constant 0 : i32
    return %arg0, %c0_i32, %c0_i32_0 : i32, i32, i32
  }
  func.func @transform_1(%arg0: i32) -> (i32, i32) {
    %c0_i32 = arith.constant 0 : i32
    %c0_i32_0 = arith.constant 0 : i32
    %c0_i32_1 = arith.constant 0 : i32
    return %c0_i32, %c0_i32_0 : i32, i32
  }
  func.func @transform_2(%arg0: i32) -> (i32, i32, i32) {
    %c0_i32 = arith.constant 0 : i32
    %c0_i32_0 = arith.constant 0 : i32
    %c0_i32_1 = arith.constant 0 : i32
    return %arg0, %c0_i32, %c0_i32_0 : i32, i32, i32
  }
  func.func @transform_3(%arg0: i32) -> (i32, i32, i32) {
    %c0_i32 = arith.constant 0 : i32
    %c0_i32_0 = arith.constant 0 : i32
    %c0_i32_1 = arith.constant 0 : i32
    return %arg0, %c0_i32, %c0_i32_0 : i32, i32, i32
  }
}

module attributes {stable_mosaic.version = 11 : i64} {
  func.func @_conv_norm_act_kernel(%arg0: i32, %arg1: memref<6x10x40xf32, #tpu.memory_space<vmem>>, %arg2: memref<120x128xf32, #tpu.memory_space<vmem>>, %arg3: memref<6x1x128xf32, #tpu.memory_space<vmem>>, %arg4: memref<6x1x128xf32, #tpu.memory_space<vmem>>, %arg5: memref<6x8x128xf32, #tpu.memory_space<vmem>>) attributes {dimension_semantics = [#tpu.dimension_semantics<parallel>], iteration_bounds = array<i64: 1>, scalar_prefetch = 0 : i64, scratch_operands = 0 : i64, tpu.core_type = #tpu.core_type<tc>, window_params = [{transform_indices = @transform_0, window_bounds = array<i64: 6, 10, 40>}, {pipeline_mode = #tpu.pipeline_mode<synchronous>, transform_indices = @transform_1, window_bounds = array<i64: 120, 128>}, {transform_indices = @transform_2, window_bounds = array<i64: 6, 1, 128>}, {transform_indices = @transform_3, window_bounds = array<i64: 6, 1, 128>}, {transform_indices = @transform_4, window_bounds = array<i64: 6, 8, 128>}]} {
    %c0 = arith.constant 0 : index
    %c0_0 = arith.constant 0 : index
    %c0_1 = arith.constant 0 : index
    %0 = vector.load %arg1[%c0, %c0_0, %c0_1] : memref<6x10x40xf32, #tpu.memory_space<vmem>>, vector<6x8x40xf32>
    %1 = vector.shape_cast %0 : vector<6x8x40xf32> to vector<48x40xf32>
    %c0_2 = arith.constant 0 : index
    %c1 = arith.constant 1 : index
    %c0_3 = arith.constant 0 : index
    %2 = vector.load %arg1[%c0_2, %c1, %c0_3] : memref<6x10x40xf32, #tpu.memory_space<vmem>>, vector<6x8x40xf32>
    %3 = vector.shape_cast %2 : vector<6x8x40xf32> to vector<48x40xf32>
    %c0_4 = arith.constant 0 : index
    %c2 = arith.constant 2 : index
    %c0_5 = arith.constant 0 : index
    %4 = vector.load %arg1[%c0_4, %c2, %c0_5] : memref<6x10x40xf32, #tpu.memory_space<vmem>>, vector<6x8x40xf32>
    %5 = vector.shape_cast %4 : vector<6x8x40xf32> to vector<48x40xf32>
    %6 = tpu.concatenate %1, %3, %5 in 1 : vector<48x40xf32>, vector<48x40xf32>, vector<48x40xf32> -> vector<48x120xf32>
    %c0_6 = arith.constant 0 : index
    %c0_7 = arith.constant 0 : index
    %7 = vector.load %arg2[%c0_6, %c0_7] : memref<120x128xf32, #tpu.memory_space<vmem>>, vector<120x128xf32>
    %cst = arith.constant dense<0.000000e+00> : vector<48x128xf32>
    %8 = tpu.matmul %6, %7, %cst {dimension_numbers = #tpu.dot_dimension_numbers<[1], [0], [0], [1], [0, 0, 1, 1], [], []>} : vector<48x120xf32>, vector<120x128xf32>, vector<48x128xf32> -> vector<48x128xf32>
    %9 = vector.shape_cast %8 : vector<48x128xf32> to vector<6x8x128xf32>
    %c0_8 = arith.constant 0 : index
    %c0_9 = arith.constant 0 : index
    %c0_10 = arith.constant 0 : index
    %10 = vector.load %arg3[%c0_8, %c0_9, %c0_10] : memref<6x1x128xf32, #tpu.memory_space<vmem>>, vector<6x1x128xf32>
    %11 = vector.broadcast %10 : vector<6x1x128xf32> to vector<6x8x128xf32>
    %12 = arith.mulf %9, %11 : vector<6x8x128xf32>
    %c0_11 = arith.constant 0 : index
    %c0_12 = arith.constant 0 : index
    %c0_13 = arith.constant 0 : index
    %13 = vector.load %arg4[%c0_11, %c0_12, %c0_13] : memref<6x1x128xf32, #tpu.memory_space<vmem>>, vector<6x1x128xf32>
    %14 = vector.broadcast %13 : vector<6x1x128xf32> to vector<6x8x128xf32>
    %15 = arith.addf %12, %14 : vector<6x8x128xf32>
    %16 = arith.negf %15 : vector<6x8x128xf32>
    %17 = math.exp %16 : vector<6x8x128xf32>
    %cst_14 = arith.constant 1.000000e+00 : f32
    %18 = vector.broadcast %cst_14 : f32 to vector<6x8x128xf32>
    %19 = arith.addf %18, %17 : vector<6x8x128xf32>
    %20 = arith.divf %18, %19 : vector<6x8x128xf32>
    %21 = arith.mulf %15, %20 : vector<6x8x128xf32>
    %c0_15 = arith.constant 0 : index
    %c0_16 = arith.constant 0 : index
    %c0_17 = arith.constant 0 : index
    %22 = vector.load %arg5[%c0_15, %c0_16, %c0_17] : memref<6x8x128xf32, #tpu.memory_space<vmem>>, vector<6x8x128xf32>
    tpu.vector_store %arg5[%c0_15, %c0_16, %c0_17], %21 {strides = array<i32>} : memref<6x8x128xf32, #tpu.memory_space<vmem>>, vector<6x8x128xf32>,
    return
  }
  func.func @transform_0(%arg0: i32) -> (i32, i32, i32) {
    %c0_i32 = arith.constant 0 : i32
    %c0_i32_0 = arith.constant 0 : i32
    %c0_i32_1 = arith.constant 0 : i32
    return %arg0, %c0_i32, %c0_i32_0 : i32, i32, i32
  }
  func.func @transform_1(%arg0: i32) -> (i32, i32) {
    %c0_i32 = arith.constant 0 : i32
    %c0_i32_0 = arith.constant 0 : i32
    %c0_i32_1 = arith.constant 0 : i32
    return %c0_i32, %c0_i32_0 : i32, i32
  }
  func.func @transform_2(%arg0: i32) -> (i32, i32, i32) {
    %c0_i32 = arith.constant 0 : i32
    %c0_i32_0 = arith.constant 0 : i32
    %c0_i32_1 = arith.constant 0 : i32
    return %arg0, %c0_i32, %c0_i32_0 : i32, i32, i32
  }
  func.func @transform_3(%arg0: i32) -> (i32, i32, i32) {
    %c0_i32 = arith.constant 0 : i32
    %c0_i32_0 = arith.constant 0 : i32
    %c0_i32_1 = arith.constant 0 : i32
    return %arg0, %c0_i32, %c0_i32_0 : i32, i32, i32
  }
  func.func @transform_4(%arg0: i32) -> (i32, i32, i32) {
    %c0_i32 = arith.constant 0 : i32
    %c0_i32_0 = arith.constant 0 : i32
    %c0_i32_1 = arith.constant 0 : i32
    return %arg0, %c0_i32, %c0_i32_0 : i32, i32, i32
  }
}

</mosaic_0001>

<bundles_post_ra>
// kernel: tile.14
= control target key start
LH: loop header
LB: loop body
LE: loop exit
PB: predicated region body
PF: predicated region fallthrough
CT: control target
= control target key end

     0   :  { %s7_s6 = smov 3  ;;  %s21_s9 = smov 3  ;;  %vm4_vm0 = vcmask 130048   ;;  %vm11_vm1 = vcmask 1048448   ;;  %vm18_vm2 = vcmask 917248   ;;  %vm25_vm3 = vcmask 786048   ;;  %s119_s0 = inlined_call_operand.vmem [shape: f32[2,8,16], index: 0, kind: input, shape index: {}]   ;;  %s120_s1 = inlined_call_operand.vmem [shape: f32[2,128], index: 1, kind: output, shape index: {}]  }
   0x1   :  { %v61_v0 = vld [vmem:[%s119_s0 + $0x7] ss:$8 sm:%s7_s6]   ;;  %s75_s10 = smov 112   ;;  %v63_v1 = vld [vmem:[%s119_s0 + $0x5] ss:$8 sm:%s21_s9]   ;;  %s76_s13 = smov 80  }
   0x2   :  { %9 = vrot.lane.b32.xlu0 %v61_v0, %s75_s10  ;;  %23 = vrot.lane.b32.xlu1 %v63_v1, %s76_s13  ;;  %s14_s14 = smov 3  ;;  %s28_s15 = smov 3  ;;  %vm32_vm4 = vcmask 654848   ;;  %vm39_vm5 = vcmask 523648   ;;  %vm46_vm6 = vcmask 392448   ;;  %vm53_vm7 = vcmask 261248  }
   0x3   :  { %s35_s16 = smov 3  ;;  %v62_v3 = vld [vmem:[%s119_s0 + $0x6] ss:$8 sm:%s14_s14]   ;;  %s77_s21 = smov 48   ;;  %v64_v4 = vld [vmem:[%s119_s0 + $0x4] ss:$8 sm:%s28_s15]  }
   0x4   :  { %v65_v2 = vld [vmem:[%s119_s0 + $0x3] ss:$8 sm:%s35_s16]   ;;  %s42_s24 = smov 3  ;;  %s78_s25 = smov 96  }
   0x5   :  { %37 = vrot.lane.b32.xlu2 %v65_v2, %s77_s21  ;;  %s79_s26 = smov 64   ;;  %s49_s27 = smov 3  ;;  %v66_v5 = vld [vmem:[%s119_s0 + $0x2] ss:$8 sm:%s42_s24]  }
   0x6   :  { %v67_v6 = vld [vmem:[%s119_s0 + $0x1] ss:$8 sm:%s49_s27]   ;;  %s80_s3 = smov 32   ;;  %s81_s4 = smov 16  }
   0x7   :  { %s2_s5 = smov 3 }
   0x8   :  { %v3_v7 = vld [vmem:[%s119_s0] ss:$8 sm:%s2_s5]  }
   0x9   :  { %5 = vst.msk [vmem:[#allocation0] sm:$0x3] %vm4_vm0, %v3_v7  }
   0xa   :  { %16 = vrot.lane.b32.xlu0 %v62_v3, %s78_s25  ;;  %30 = vrot.lane.b32.xlu1 %v64_v4, %s79_s26 }
   0xd   :  { %44 = vrot.lane.b32.xlu2 %v66_v5, %s80_s3 }
  0x12   :  { %51 = vrot.lane.b32.xlu0 %v67_v6, %s81_s4 }
  0x5f   :  { %v38_v8 = vpop.permute.xlu2 %37  }
  0x67   :  { %v45_v9 = vpop.permute.xlu2 %44  }
  0x74   :  { %v10_v10 = vpop.permute.xlu0 %9   ;;  %v24_v11 = vpop.permute.xlu1 %23  }
  0x75   :  { %12 = vst.msk [vmem:[#allocation0] sm:$0x3] %vm11_vm1, %v10_v10  }
  0x7c   :  { %v17_v12 = vpop.permute.xlu0 %16   ;;  %v31_v13 = vpop.permute.xlu1 %30  }
  0x7d   :  { %19 = vst.msk [vmem:[#allocation0] sm:$0x3] %vm18_vm2, %v17_v12  }
  0x7e   :  { %26 = vst.msk [vmem:[#allocation0] sm:$0x3] %vm25_vm3, %v24_v11  }
  0x7f   :  { %33 = vst.msk [vmem:[#allocation0] sm:$0x3] %vm32_vm4, %v31_v13  }
  0x80   :  { %40 = vst.msk [vmem:[#allocation0] sm:$0x3] %vm39_vm5, %v38_v8  }
  0x81   :  { %47 = vst.msk [vmem:[#allocation0] sm:$0x3] %vm46_vm6, %v45_v9  }
  0x84   :  { %v52_v14 = vpop.permute.xlu0 %51  }
  0x85   :  { %54 = vst.msk [vmem:[#allocation0] sm:$0x3] %vm53_vm7, %v52_v14  }
  0x8c   :  { %v57_v15 = vld [vmem:[#allocation0] sm:$0x3] }
  0x8d   :  { %60 = vst [vmem:[%s120_s1] sm:$0x3] %v57_v15 }

// kernel: block_forward.2
= control target key start
LH: loop header
LB: loop body
LE: loop exit
PB: predicated region body
PF: predicated region fallthrough
CT: control target
= control target key end

     0   :  { %s313_s16 = smov 80   ;;  %s314_s17 = smov 40   ;;  %vm79_vm0 = vcmask 326656   ;;  %vm86_vm1 = vcmask 654336   ;;  %vm108_vm2 = vcmask 982016   ;;  %s500_s0 = inlined_call_operand.vmem [shape: f32[6,10,40], index: 0, kind: input, shape index: {}]   ;;  %s501_s1 = inlined_call_operand.vmem [shape: f32[120,128], index: 1, kind: input, shape index: {}]   ;;  %s502_s2 = inlined_call_operand.vmem [shape: f32[6,1,128], index: 2, kind: output, shape index: {0}]   ;;  %s503_s3 = inlined_call_operand.vmem [shape: f32[6,1,128], index: 3, kind: output, shape index: {1}]  }
   0x1   :  { %v27_v0 = vld [vmem:[%s500_s0 + $0x22] sm:$0xff]  ;;  %v22_v2 = vld [vmem:[%s500_s0 + $0x31] sm:$0xff] }
   0x2   :  { %v21_v1 = vld [vmem:[%s500_s0 + $0x21] sm:$0xff]  ;;  %65 = vrot.lane.b32.xlu1 %v27_v0, %s313_s16  ;;  %43 = vrot.lane.b32.xlu2 %v22_v2, %s314_s17  ;;  %v107_v3 = vld [vmem:[%s501_s1 + $0x70] sm:$0xff] }
   0x3   :  { %41 = vrot.lane.b32.xlu0 %v21_v1, %s314_s17  ;;  %v106_v4 = vld [vmem:[%s501_s1 + $0x68] sm:$0xff]  ;;  %267 = vmatpush.msra.mxu2 %v107_v3  ;;  %v105_v7 = vld [vmem:[%s501_s1 + $0x60] sm:$0xff]  ;;  %v24_v8 = vld [vmem:[%s500_s0 + $0x51] sm:$0xff] }
   0x4   :  { %268 = vmatpush.msra.mxu3 %v107_v3  ;;  %v29_v5 = vld [vmem:[%s500_s0 + $0x42] sm:$0xff]  ;;  %128 = vmatpush.msra.mxu0 %v107_v3  ;;  %v104_v9 = vld [vmem:[%s501_s1 + $0x58] sm:$0xff]  ;;  %v103_v10 = vld [vmem:[%s501_s1 + $0x50] sm:$0xff] }
   0x5   :  { %v23_v6 = vld [vmem:[%s500_s0 + $0x41] sm:$0xff]  ;;  %266 = vmatpush.msra.mxu1 %v107_v3  ;;  %270 = vmatpush.msra.mxu2 %v106_v4  ;;  %v30_v12 = vld [vmem:[%s500_s0 + $0x52] sm:$0xff] }
   0x6   :  { %271 = vmatpush.msra.mxu3 %v106_v4  ;;  %129 = vmatpush.msra.mxu0 %v106_v4  ;;  %v102_v11 = vld [vmem:[%s501_s1 + $0x48] sm:$0xff]  ;;  %v28_v13 = vld [vmem:[%s500_s0 + $0x32] sm:$0xff]  ;;  %v101_v14 = vld [vmem:[%s501_s1 + $0x40] sm:$0xff] }
   0x7   :  { %269 = vmatpush.msra.mxu1 %v106_v4  ;;  %273 = vmatpush.msra.mxu2 %v105_v7  ;;  %v19_v15 = vld [vmem:[%s500_s0 + $0x1] sm:$0xff]  ;;  %v100_v16 = vld [vmem:[%s501_s1 + $0x38] sm:$0xff]  ;;  %v99_v17 = vld [vmem:[%s501_s1 + $0x30] sm:$0xff] }
   0x8   :  { %274 = vmatpush.msra.mxu3 %v105_v7  ;;  %130 = vmatpush.msra.mxu0 %v105_v7  ;;  %v98_v18 = vld [vmem:[%s501_s1 + $0x28] sm:$0xff]  ;;  %v20_v20 = vld [vmem:[%s500_s0 + $0x11] sm:$0xff]  ;;  %v97_v21 = vld [vmem:[%s501_s1 + $0x20] sm:$0xff] }
   0x9   :  { %272 = vmatpush.msra.mxu1 %v105_v7  ;;  %276 = vmatpush.msra.mxu2 %v104_v9  ;;  %v25_v19 = vld [vmem:[%s500_s0 + $0x2] sm:$0xff]  ;;  %v26_v22 = vld [vmem:[%s500_s0 + $0x12] sm:$0xff] }
   0xa   :  { %69 = vrot.lane.b32.xlu1 %v29_v5, %s313_s16  ;;  %47 = vrot.lane.b32.xlu2 %v24_v8, %s314_s17  ;;  %v96_v23 = vld [vmem:[%s501_s1 + $0x18] sm:$0xff]  ;;  %v95_v24 = vld [vmem:[%s501_s1 + $0x10] sm:$0xff] }
   0xb   :  { %45 = vrot.lane.b32.xlu0 %v23_v6, %s314_s17  ;;  %277 = vmatpush.msra.mxu3 %v104_v9  ;;  %v94_v25 = vld [vmem:[%s501_s1 + $0x8] sm:$0xff]  ;;  %v93_v26 = vld [vmem:[%s501_s1] sm:$0xff]  ;;  %v16_v39 = vld [vmem:[%s500_s0 + $0x30] sm:$0xff] }
   0xc   :  { %131 = vmatpush.msra.mxu0 %v104_v9  ;;  %279 = vmatpush.msra.mxu2 %v103_v10  ;;  %v15_v28 = vld [vmem:[%s500_s0 + $0x20] sm:$0xff]  ;;  %v18_v40 = vld [vmem:[%s500_s0 + $0x50] sm:$0xff] }
   0xd   :  { %275 = vmatpush.msra.mxu1 %v104_v9  ;;  %280 = vmatpush.msra.mxu3 %v103_v10  ;;  %v17_v34 = vld [vmem:[%s500_s0 + $0x40] sm:$0xff]  ;;  %v14_v49 = vld [vmem:[%s500_s0 + $0x10] sm:$0xff] }
   0xe   :  { %132 = vmatpush.msra.mxu0 %v103_v10  ;;  %282 = vmatpush.msra.mxu2 %v102_v11  ;;  %v13_v48 = vld [vmem:[%s500_s0] sm:$0xff] }
   0xf   :  { %278 = vmatpush.msra.mxu1 %v103_v10  ;;  %283 = vmatpush.msra.mxu3 %v102_v11 }
  0x10   :  { %285 = vmatpush.msra.mxu2 %v101_v14  ;;  %133 = vmatpush.msra.mxu0 %v102_v11 }
  0x11   :  { %281 = vmatpush.msra.mxu1 %v102_v11  ;;  %286 = vmatpush.msra.mxu3 %v101_v14 }
  0x12   :  { %71 = vrot.lane.b32.xlu1 %v30_v12, %s313_s16  ;;  %37 = vrot.lane.b32.xlu2 %v19_v15, %s314_s17 }
  0x13   :  { %67 = vrot.lane.b32.xlu0 %v28_v13, %s313_s16  ;;  %288 = vmatpush.msra.mxu2 %v100_v16 }
  0x14   :  { %134 = vmatpush.msra.mxu0 %v101_v14  ;;  %284 = vmatpush.msra.mxu1 %v101_v14 }
  0x15   :  { %291 = vmatpush.msra.mxu2 %v99_v17  ;;  %289 = vmatpush.msra.mxu3 %v100_v16 }
  0x16   :  { %135 = vmatpush.msra.mxu0 %v100_v16  ;;  %287 = vmatpush.msra.mxu1 %v100_v16 }
  0x17   :  { %294 = vmatpush.msra.mxu2 %v98_v18  ;;  %292 = vmatpush.msra.mxu3 %v99_v17 }
  0x18   :  { %136 = vmatpush.msra.mxu0 %v99_v17  ;;  %290 = vmatpush.msra.mxu1 %v99_v17 }
  0x19   :  { %297 = vmatpush.msra.mxu2 %v97_v21  ;;  %295 = vmatpush.msra.mxu3 %v98_v18 }
  0x1a   :  { %61 = vrot.lane.b32.xlu1 %v25_v19, %s313_s16  ;;  %63 = vrot.lane.b32.xlu2 %v26_v22, %s313_s16 }
  0x1b   :  { %39 = vrot.lane.b32.xlu0 %v20_v20, %s314_s17  ;;  %300 = vmatpush.msra.mxu2 %v96_v23 }
  0x1c   :  { %137 = vmatpush.msra.mxu0 %v98_v18  ;;  %293 = vmatpush.msra.mxu1 %v98_v18 }
  0x1d   :  { %303 = vmatpush.msra.mxu2 %v95_v24  ;;  %298 = vmatpush.msra.mxu3 %v97_v21 }
  0x1e   :  { %138 = vmatpush.msra.mxu0 %v97_v21  ;;  %296 = vmatpush.msra.mxu1 %v97_v21 }
  0x1f   :  { %306 = vmatpush.msra.mxu2 %v94_v25  ;;  %301 = vmatpush.msra.mxu3 %v96_v23 }
  0x20   :  { %139 = vmatpush.msra.mxu0 %v96_v23  ;;  %299 = vmatpush.msra.mxu1 %v96_v23 }
  0x21   :  { %304 = vmatpush.msra.mxu3 %v95_v24  ;;  %309 = vmatpush.msra.mxu2 %v93_v26 }
  0x22   :  { %140 = vmatpush.msra.mxu0 %v95_v24  ;;  %302 = vmatpush.msra.mxu1 %v95_v24 }
  0x23   :  { %307 = vmatpush.msra.mxu3 %v94_v25 }
  0x24   :  { %141 = vmatpush.msra.mxu0 %v94_v25  ;;  %305 = vmatpush.msra.mxu1 %v94_v25 }
  0x25   :  { %310 = vmatpush.msra.mxu3 %v93_v26 }
  0x26   :  { %142 = vmatpush.msra.mxu0 %v93_v26  ;;  %308 = vmatpush.msra.mxu1 %v93_v26 }
  0x5c   :  { %v44_v27 = vpop.permute.xlu2 %43 }
  0x5d   :  { %v83_v42 = vsel %vm79_vm0, %v16_v39, %v44_v27 }
  0x64   :  { %v48_v33 = vpop.permute.xlu2 %47 }
  0x65   :  { %v85_v43 = vsel %vm79_vm0, %v18_v40, %v48_v33 }
  0x6c   :  { %v38_v41 = vpop.permute.xlu2 %37 }
  0x6d   :  { %v80_v51 = vsel %vm79_vm0, %v13_v48, %v38_v41 }
  0x74   :  { %v66_v29 = vpop.permute.xlu1 %65  ;;  %v64_v50 = vpop.permute.xlu2 %63 }
  0x75   :  { %v42_v30 = vpop.permute.xlu0 %41 }
  0x76   :  { %v82_v31 = vsel %vm79_vm0, %v15_v28, %v42_v30 }
  0x77   :  { %v89_v32 = vsel %vm86_vm1, %v82_v31, %v66_v29 }
  0x78   :  { %262 = vmatmul.msk.f32.vlgmr.msra.gmra.mxu2 %vm108_vm2, %v89_v32 }
  0x7c   :  { %v70_v35 = vpop.permute.xlu1 %69 }
  0x7d   :  { %v46_v36 = vpop.permute.xlu0 %45 }
  0x7e   :  { %v84_v37 = vsel %vm79_vm0, %v17_v34, %v46_v36 }
  0x7f   :  { %v91_v38 = vsel %vm86_vm1, %v84_v37, %v70_v35 }
  0x80   :  { %264 = vmatmul.msk.f32.vlgmr.msra.gmra.mxu3 %vm108_vm2, %v91_v38 }
  0x84   :  { %v72_v44 = vpop.permute.xlu1 %71 }
  0x85   :  { %v68_v45 = vpop.permute.xlu0 %67  ;;  %v92_v47 = vsel %vm86_vm1, %v85_v43, %v72_v44 }
  0x86   :  { %v90_v46 = vsel %vm86_vm1, %v83_v42, %v68_v45 }
  0x87   :  { %263 = vmatmul.msk.f32.gmra.mxu2 %vm108_vm2, %v90_v46 }
  0x88   :  { %265 = vmatmul.msk.f32.gmra.mxu3 %vm108_vm2, %v92_v47 }
  0x8c   :  { %v62_v52 = vpop.permute.xlu1 %61 }
  0x8d   :  { %v40_v53 = vpop.permute.xlu0 %39  ;;  %v87_v55 = vsel %vm86_vm1, %v80_v51, %v62_v52 }
  0x8e   :  { %v81_v54 = vsel %vm79_vm0, %v14_v49, %v40_v53  ;;  %260 = vmatmul.msk.f32.vlgmr.msra.gmra.mxu0 %vm108_vm2, %v87_v55 }
  0x8f   :  { %v88_v56 = vsel %vm86_vm1, %v81_v54, %v64_v50 }
  0x90   :  { %261 = vmatmul.msk.f32.vlgmr.msra.gmra.mxu1 %vm108_vm2, %v88_v56 }
  0xfb   :  { %v150_v57 = vpop.f32.mrf.mxu2 }
  0xfc   :  { %v174_v58 = vrot.slane %v150_v57, 4  ;;  %v206_v59 = vmul.f32 %v150_v57, %v150_v57 }
  0xfe   :  { %v175_v60 = vadd.f32 %v174_v58, %v150_v57  ;;  %v222_v61 = vrot.slane %v206_v59, 4 }
 0x100   :  { %v176_v62 = vrot.slane %v175_v60, 2  ;;  %v223_v63 = vadd.f32 %v222_v61, %v206_v59 }
 0x102   :  { %v177_v0 = vadd.f32 %v176_v62, %v175_v60  ;;  %v224_v1 = vrot.slane %v223_v63, 2 }
 0x103   :  { %v156_v2 = vpop.f32.mrf.mxu3 }
 0x104   :  { %v178_v3 = vrot.slane %v177_v0, 1  ;;  %v225_v4 = vadd.f32 %v224_v1, %v223_v63  ;;  %v186_v5 = vrot.slane %v156_v2, 4  ;;  %v208_v6 = vmul.f32 %v156_v2, %v156_v2 }
 0x106   :  { %v179_v7 = vadd.f32 %v178_v3, %v177_v0  ;;  %v226_v8 = vrot.slane %v225_v4, 1  ;;  %v187_v9 = vadd.f32 %v186_v5, %v156_v2  ;;  %v234_v10 = vrot.slane %v208_v6, 4 }
 0x108   :  { %200 = vst [vmem:[%s502_s2 + $0x2] sm:$0x1] %v179_v7  ;;  %v227_v11 = vadd.f32 %v226_v8, %v225_v4  ;;  %v188_v12 = vrot.slane %v187_v9, 2  ;;  %v235_v13 = vadd.f32 %v234_v10, %v208_v6 }
 0x10a   :  { %248 = vst [vmem:[%s503_s3 + $0x2] sm:$0x1] %v227_v11  ;;  %v189_v14 = vadd.f32 %v188_v12, %v187_v9  ;;  %v236_v15 = vrot.slane %v235_v13, 2  ;;  %v153_v16 = vpop.f32.mrf.mxu2 }
 0x10b   :  { %v180_v17 = vrot.slane %v153_v16, 4  ;;  %v207_v18 = vmul.f32 %v153_v16, %v153_v16  ;;  %v159_v19 = vpop.f32.mrf.mxu3  ;;  %v144_v24 = vpop.f32.mrf.mxu0 }
 0x10c   :  { %v190_v20 = vrot.slane %v189_v14, 1  ;;  %v237_v21 = vadd.f32 %v236_v15, %v235_v13  ;;  %v192_v22 = vrot.slane %v159_v19, 4  ;;  %v209_v23 = vmul.f32 %v159_v19, %v159_v19 }
 0x10d   :  { %v181_v25 = vadd.f32 %v180_v17, %v153_v16  ;;  %v228_v26 = vrot.slane %v207_v18, 4  ;;  %v162_v27 = vrot.slane %v144_v24, 4  ;;  %v204_v28 = vmul.f32 %v144_v24, %v144_v24  ;;  %v147_v29 = vpop.f32.mrf.mxu1 }
 0x10e   :  { %v191_v30 = vadd.f32 %v190_v20, %v189_v14  ;;  %v238_v31 = vrot.slane %v237_v21, 1  ;;  %v193_v32 = vadd.f32 %v192_v22, %v159_v19  ;;  %v240_v33 = vrot.slane %v209_v23, 4 }
 0x10f   :  { %v182_v34 = vrot.slane %v181_v25, 2  ;;  %v229_v35 = vadd.f32 %v228_v26, %v207_v18  ;;  %v163_v36 = vadd.f32 %v162_v27, %v144_v24  ;;  %v210_v37 = vrot.slane %v204_v28, 4 }
 0x110   :  { %202 = vst [vmem:[%s502_s2 + $0x4] sm:$0x1] %v191_v30  ;;  %v239_v38 = vadd.f32 %v238_v31, %v237_v21  ;;  %v194_v39 = vrot.slane %v193_v32, 2  ;;  %v241_v40 = vadd.f32 %v240_v33, %v209_v23  ;;  %v168_v41 = vrot.slane %v147_v29, 4 }
 0x111   :  { %v183_v42 = vadd.f32 %v182_v34, %v181_v25  ;;  %v230_v43 = vrot.slane %v229_v35, 2  ;;  %v164_v44 = vrot.slane %v163_v36, 2  ;;  %v211_v45 = vadd.f32 %v210_v37, %v204_v28 }
 0x112   :  { %250 = vst [vmem:[%s503_s3 + $0x4] sm:$0x1] %v239_v38  ;;  %v195_v46 = vadd.f32 %v194_v39, %v193_v32  ;;  %v242_v47 = vrot.slane %v241_v40, 2  ;;  %v169_v48 = vadd.f32 %v168_v41, %v147_v29  ;;  %v205_v49 = vmul.f32 %v147_v29, %v147_v29 }
 0x113   :  { %v184_v50 = vrot.slane %v183_v42, 1  ;;  %v231_v51 = vadd.f32 %v230_v43, %v229_v35  ;;  %v165_v52 = vadd.f32 %v164_v44, %v163_v36  ;;  %v212_v53 = vrot.slane %v211_v45, 2 }
 0x114   :  { %v196_v54 = vrot.slane %v195_v46, 1  ;;  %v243_v55 = vadd.f32 %v242_v47, %v241_v40  ;;  %v170_v56 = vrot.slane %v169_v48, 2  ;;  %v216_v57 = vrot.slane %v205_v49, 4 }
 0x115   :  { %v185_v58 = vadd.f32 %v184_v50, %v183_v42  ;;  %v232_v59 = vrot.slane %v231_v51, 1  ;;  %v166_v60 = vrot.slane %v165_v52, 1  ;;  %v213_v61 = vadd.f32 %v212_v53, %v211_v45 }
 0x116   :  { %v197_v62 = vadd.f32 %v196_v54, %v195_v46  ;;  %v244_v63 = vrot.slane %v243_v55, 1  ;;  %v171_v0 = vadd.f32 %v170_v56, %v169_v48  ;;  %v217_v1 = vadd.f32 %v216_v57, %v205_v49 }
 0x117   :  { %201 = vst [vmem:[%s502_s2 + $0x3] sm:$0x1] %v185_v58  ;;  %v233_v2 = vadd.f32 %v232_v59, %v231_v51  ;;  %v167_v3 = vadd.f32 %v166_v60, %v165_v52  ;;  %v214_v4 = vrot.slane %v213_v61, 1 }
 0x118   :  { %203 = vst [vmem:[%s502_s2 + $0x5] sm:$0x1] %v197_v62  ;;  %v245_v5 = vadd.f32 %v244_v63, %v243_v55  ;;  %v172_v6 = vrot.slane %v171_v0, 1  ;;  %v218_v7 = vrot.slane %v217_v1, 2 }
 0x119   :  { %249 = vst [vmem:[%s503_s3 + $0x3] sm:$0x1] %v233_v2  ;;  %v215_v8 = vadd.f32 %v214_v4, %v213_v61 }
 0x11a   :  { %251 = vst [vmem:[%s503_s3 + $0x5] sm:$0x1] %v245_v5  ;;  %v173_v9 = vadd.f32 %v172_v6, %v171_v0  ;;  %v219_v10 = vadd.f32 %v218_v7, %v217_v1 }
 0x11b   :  { %198 = vst [vmem:[%s502_s2] sm:$0x1] %v167_v3 }
 0x11c   :  { %246 = vst [vmem:[%s503_s3] sm:$0x1] %v215_v8  ;;  %v220_v11 = vrot.slane %v219_v10, 1 }
 0x11d   :  { %199 = vst [vmem:[%s502_s2 + $0x1] sm:$0x1] %v173_v9 }
 0x11e   :  { %v221_v12 = vadd.f32 %v220_v11, %v219_v10 }
 0x120   :  { %247 = vst [vmem:[%s503_s3 + $0x1] sm:$0x1] %v221_v12 }

// kernel: block_forward.3
= control target key start
LH: loop header
LB: loop body
LE: loop exit
PB: predicated region body
PF: predicated region fallthrough
CT: control target
= control target key end

     0   :  { %s451_s19 = smov 80   ;;  %s452_s20 = smov 40   ;;  %vm83_vm0 = vcmask 326656   ;;  %vm90_vm1 = vcmask 654336   ;;  %vm112_vm2 = vcmask 982016   ;;  %s710_s0 = inlined_call_operand.vmem [shape: f32[6,10,40], index: 0, kind: input, shape index: {}]   ;;  %s711_s1 = inlined_call_operand.vmem [shape: f32[120,128], index: 1, kind: input, shape index: {}]   ;;  %s712_s2 = inlined_call_operand.vmem [shape: f32[6,1,128], index: 2, kind: input, shape index: {}]   ;;  %s713_s3 = inlined_call_operand.vmem [shape: f32[6,1,128], index: 3, kind: input, shape index: {}]   ;;  %s714_s4 = inlined_call_operand.vmem [shape: f32[6,8,128], index: 4, kind: output, shape index: {}]  }
   0x1   :  { %v31_v0 = vld [vmem:[%s710_s0 + $0x22] sm:$0xff]  ;;  %v26_v2 = vld [vmem:[%s710_s0 + $0x31] sm:$0xff] }
   0x2   :  { %v25_v1 = vld [vmem:[%s710_s0 + $0x21] sm:$0xff]  ;;  %69 = vrot.lane.b32.xlu1 %v31_v0, %s451_s19  ;;  %47 = vrot.lane.b32.xlu2 %v26_v2, %s452_s20  ;;  %v111_v3 = vld [vmem:[%s711_s1 + $0x70] sm:$0xff] }
   0x3   :  { %45 = vrot.lane.b32.xlu0 %v25_v1, %s452_s20  ;;  %v110_v4 = vld [vmem:[%s711_s1 + $0x68] sm:$0xff]  ;;  %369 = vmatpush.msra.mxu2 %v111_v3  ;;  %v109_v7 = vld [vmem:[%s711_s1 + $0x60] sm:$0xff]  ;;  %v28_v8 = vld [vmem:[%s710_s0 + $0x51] sm:$0xff] }
   0x4   :  { %370 = vmatpush.msra.mxu3 %v111_v3  ;;  %v33_v5 = vld [vmem:[%s710_s0 + $0x42] sm:$0xff]  ;;  %132 = vmatpush.msra.mxu0 %v111_v3  ;;  %v108_v9 = vld [vmem:[%s711_s1 + $0x58] sm:$0xff]  ;;  %v107_v10 = vld [vmem:[%s711_s1 + $0x50] sm:$0xff] }
   0x5   :  { %v27_v6 = vld [vmem:[%s710_s0 + $0x41] sm:$0xff]  ;;  %368 = vmatpush.msra.mxu1 %v111_v3  ;;  %372 = vmatpush.msra.mxu2 %v110_v4  ;;  %v34_v12 = vld [vmem:[%s710_s0 + $0x52] sm:$0xff] }
   0x6   :  { %373 = vmatpush.msra.mxu3 %v110_v4  ;;  %133 = vmatpush.msra.mxu0 %v110_v4  ;;  %v106_v11 = vld [vmem:[%s711_s1 + $0x48] sm:$0xff]  ;;  %v32_v13 = vld [vmem:[%s710_s0 + $0x32] sm:$0xff]  ;;  %v105_v14 = vld [vmem:[%s711_s1 + $0x40] sm:$0xff] }
   0x7   :  { %371 = vmatpush.msra.mxu1 %v110_v4  ;;  %375 = vmatpush.msra.mxu2 %v109_v7  ;;  %v23_v15 = vld [vmem:[%s710_s0 + $0x1] sm:$0xff]  ;;  %v104_v16 = vld [vmem:[%s711_s1 + $0x38] sm:$0xff]  ;;  %v103_v17 = vld [vmem:[%s711_s1 + $0x30] sm:$0xff] }
   0x8   :  { %376 = vmatpush.msra.mxu3 %v109_v7  ;;  %134 = vmatpush.msra.mxu0 %v109_v7  ;;  %v102_v18 = vld [vmem:[%s711_s1 + $0x28] sm:$0xff]  ;;  %v24_v20 = vld [vmem:[%s710_s0 + $0x11] sm:$0xff]  ;;  %v101_v21 = vld [vmem:[%s711_s1 + $0x20] sm:$0xff] }
   0x9   :  { %374 = vmatpush.msra.mxu1 %v109_v7  ;;  %378 = vmatpush.msra.mxu2 %v108_v9  ;;  %v29_v19 = vld [vmem:[%s710_s0 + $0x2] sm:$0xff]  ;;  %v30_v22 = vld [vmem:[%s710_s0 + $0x12] sm:$0xff] }
   0xa   :  { %73 = vrot.lane.b32.xlu1 %v33_v5, %s451_s19  ;;  %51 = vrot.lane.b32.xlu2 %v28_v8, %s452_s20  ;;  %v100_v23 = vld [vmem:[%s711_s1 + $0x18] sm:$0xff]  ;;  %v99_v24 = vld [vmem:[%s711_s1 + $0x10] sm:$0xff] }
   0xb   :  { %49 = vrot.lane.b32.xlu0 %v27_v6, %s452_s20  ;;  %379 = vmatpush.msra.mxu3 %v108_v9  ;;  %v98_v25 = vld [vmem:[%s711_s1 + $0x8] sm:$0xff]  ;;  %v97_v26 = vld [vmem:[%s711_s1] sm:$0xff]  ;;  %v20_v39 = vld [vmem:[%s710_s0 + $0x30] sm:$0xff] }
   0xc   :  { %135 = vmatpush.msra.mxu0 %v108_v9  ;;  %381 = vmatpush.msra.mxu2 %v107_v10  ;;  %v19_v28 = vld [vmem:[%s710_s0 + $0x20] sm:$0xff]  ;;  %v22_v40 = vld [vmem:[%s710_s0 + $0x50] sm:$0xff] }
   0xd   :  { %377 = vmatpush.msra.mxu1 %v108_v9  ;;  %382 = vmatpush.msra.mxu3 %v107_v10  ;;  %v21_v34 = vld [vmem:[%s710_s0 + $0x40] sm:$0xff]  ;;  %v18_v49 = vld [vmem:[%s710_s0 + $0x10] sm:$0xff] }
   0xe   :  { %136 = vmatpush.msra.mxu0 %v107_v10  ;;  %384 = vmatpush.msra.mxu2 %v106_v11  ;;  %v17_v48 = vld [vmem:[%s710_s0] sm:$0xff] }
   0xf   :  { %380 = vmatpush.msra.mxu1 %v107_v10  ;;  %385 = vmatpush.msra.mxu3 %v106_v11  ;;  %v415_v57 = vld [vmem:[%s712_s2 + $0x2] ss:$0 sm:$0xff]  ;;  %v417_v63 = vld [vmem:[%s712_s2 + $0x4] ss:$0 sm:$0xff]  ;;  %v419_v6 = vld [vmem:[%s712_s2 + $0x3] ss:$0 sm:$0xff] }
  0x10   :  { %387 = vmatpush.msra.mxu2 %v105_v14  ;;  %137 = vmatpush.msra.mxu0 %v106_v11  ;;  %v416_v58 = vld [vmem:[%s713_s3 + $0x2] ss:$0 sm:$0xff]  ;;  %v418_v0 = vld [vmem:[%s713_s3 + $0x4] ss:$0 sm:$0xff]  ;;  %v421_v7 = vld [vmem:[%s712_s2 + $0x5] ss:$0 sm:$0xff] }
  0x11   :  { %383 = vmatpush.msra.mxu1 %v106_v11  ;;  %388 = vmatpush.msra.mxu3 %v105_v14  ;;  %v423_v9 = vld [vmem:[%s712_s2] ss:$0 sm:$0xff]  ;;  %v420_v11 = vld [vmem:[%s713_s3 + $0x3] ss:$0 sm:$0xff] }
  0x12   :  { %75 = vrot.lane.b32.xlu1 %v34_v12, %s451_s19  ;;  %41 = vrot.lane.b32.xlu2 %v23_v15, %s452_s20  ;;  %v422_v12 = vld [vmem:[%s713_s3 + $0x5] ss:$0 sm:$0xff]  ;;  %v424_v15 = vld [vmem:[%s713_s3] ss:$0 sm:$0xff] }
  0x13   :  { %71 = vrot.lane.b32.xlu0 %v32_v13, %s451_s19  ;;  %390 = vmatpush.msra.mxu2 %v104_v16  ;;  %v425_v13 = vld [vmem:[%s712_s2 + $0x1] ss:$0 sm:$0xff] }
  0x14   :  { %138 = vmatpush.msra.mxu0 %v105_v14  ;;  %386 = vmatpush.msra.mxu1 %v105_v14 }
  0x15   :  { %393 = vmatpush.msra.mxu2 %v103_v17  ;;  %391 = vmatpush.msra.mxu3 %v104_v16 }
  0x16   :  { %139 = vmatpush.msra.mxu0 %v104_v16  ;;  %389 = vmatpush.msra.mxu1 %v104_v16 }
  0x17   :  { %396 = vmatpush.msra.mxu2 %v102_v18  ;;  %394 = vmatpush.msra.mxu3 %v103_v17 }
  0x18   :  { %140 = vmatpush.msra.mxu0 %v103_v17  ;;  %392 = vmatpush.msra.mxu1 %v103_v17 }
  0x19   :  { %399 = vmatpush.msra.mxu2 %v101_v21  ;;  %397 = vmatpush.msra.mxu3 %v102_v18 }
  0x1a   :  { %65 = vrot.lane.b32.xlu1 %v29_v19, %s451_s19  ;;  %67 = vrot.lane.b32.xlu2 %v30_v22, %s451_s19  ;;  %v426_v19 = vld [vmem:[%s713_s3 + $0x1] ss:$0 sm:$0xff] }
  0x1b   :  { %43 = vrot.lane.b32.xlu0 %v24_v20, %s452_s20  ;;  %402 = vmatpush.msra.mxu2 %v100_v23 }
  0x1c   :  { %141 = vmatpush.msra.mxu0 %v102_v18  ;;  %395 = vmatpush.msra.mxu1 %v102_v18 }
  0x1d   :  { %405 = vmatpush.msra.mxu2 %v99_v24  ;;  %400 = vmatpush.msra.mxu3 %v101_v21 }
  0x1e   :  { %142 = vmatpush.msra.mxu0 %v101_v21  ;;  %398 = vmatpush.msra.mxu1 %v101_v21 }
  0x1f   :  { %408 = vmatpush.msra.mxu2 %v98_v25  ;;  %403 = vmatpush.msra.mxu3 %v100_v23 }
  0x20   :  { %143 = vmatpush.msra.mxu0 %v100_v23  ;;  %401 = vmatpush.msra.mxu1 %v100_v23 }
  0x21   :  { %406 = vmatpush.msra.mxu3 %v99_v24  ;;  %411 = vmatpush.msra.mxu2 %v97_v26 }
  0x22   :  { %144 = vmatpush.msra.mxu0 %v99_v24  ;;  %404 = vmatpush.msra.mxu1 %v99_v24 }
  0x23   :  { %409 = vmatpush.msra.mxu3 %v98_v25 }
  0x24   :  { %145 = vmatpush.msra.mxu0 %v98_v25  ;;  %407 = vmatpush.msra.mxu1 %v98_v25 }
  0x25   :  { %412 = vmatpush.msra.mxu3 %v97_v26 }
  0x26   :  { %146 = vmatpush.msra.mxu0 %v97_v26  ;;  %410 = vmatpush.msra.mxu1 %v97_v26 }
  0x5c   :  { %v48_v27 = vpop.permute.xlu2 %47 }
  0x5d   :  { %v87_v42 = vsel %vm83_vm0, %v20_v39, %v48_v27 }
  0x64   :  { %v52_v33 = vpop.permute.xlu2 %51 }
  0x65   :  { %v89_v43 = vsel %vm83_vm0, %v22_v40, %v52_v33 }
  0x6c   :  { %v42_v41 = vpop.permute.xlu2 %41 }
  0x6d   :  { %v84_v51 = vsel %vm83_vm0, %v17_v48, %v42_v41 }
  0x74   :  { %v70_v29 = vpop.permute.xlu1 %69  ;;  %v68_v50 = vpop.permute.xlu2 %67 }
  0x75   :  { %v46_v30 = vpop.permute.xlu0 %45 }
  0x76   :  { %v86_v31 = vsel %vm83_vm0, %v19_v28, %v46_v30 }
  0x77   :  { %v93_v32 = vsel %vm90_vm1, %v86_v31, %v70_v29 }
  0x78   :  { %358 = vmatmul.msk.f32.vlgmr.msra.gmra.mxu2 %vm112_vm2, %v93_v32 }
  0x7c   :  { %v74_v35 = vpop.permute.xlu1 %73 }
  0x7d   :  { %v50_v36 = vpop.permute.xlu0 %49 }
  0x7e   :  { %v88_v37 = vsel %vm83_vm0, %v21_v34, %v50_v36 }
  0x7f   :  { %v95_v38 = vsel %vm90_vm1, %v88_v37, %v74_v35 }
  0x80   :  { %360 = vmatmul.msk.f32.vlgmr.msra.gmra.mxu3 %vm112_vm2, %v95_v38 }
  0x84   :  { %v76_v44 = vpop.permute.xlu1 %75 }
  0x85   :  { %v72_v45 = vpop.permute.xlu0 %71  ;;  %v96_v47 = vsel %vm90_vm1, %v89_v43, %v76_v44 }
  0x86   :  { %v94_v46 = vsel %vm90_vm1, %v87_v42, %v72_v45 }
  0x87   :  { %359 = vmatmul.msk.f32.gmra.mxu2 %vm112_vm2, %v94_v46 }
  0x88   :  { %361 = vmatmul.msk.f32.gmra.mxu3 %vm112_vm2, %v96_v47 }
  0x8c   :  { %v66_v52 = vpop.permute.xlu1 %65 }
  0x8d   :  { %v44_v53 = vpop.permute.xlu0 %43  ;;  %v91_v55 = vsel %vm90_vm1, %v84_v51, %v66_v52 }
  0x8e   :  { %v85_v54 = vsel %vm83_vm0, %v18_v49, %v44_v53  ;;  %356 = vmatmul.msk.f32.vlgmr.msra.gmra.mxu0 %vm112_vm2, %v91_v55 }
  0x8f   :  { %v92_v56 = vsel %vm90_vm1, %v85_v54, %v68_v50 }
  0x90   :  { %357 = vmatmul.msk.f32.vlgmr.msra.gmra.mxu1 %vm112_vm2, %v92_v56 }
  0xfb   :  { %v154_v59 = vpop.f32.mrf.mxu2 }
  0xfc   :  { %v192_v60 = vmul.f32 %v415_v57, %v154_v59 }
  0xfe   :  { %v613_v61 = vadd.f32 %v416_v58, %v192_v60 }
 0x100   :  { %v364_v62 = vmul.f32 -1.442695, %v613_v61 }
 0x102   :  { %427 = vpow2.f32 %v364_v62 }
 0x103   :  { %v160_v1 = vpop.f32.mrf.mxu3 }
 0x104   :  { %v194_v2 = vmul.f32 %v417_v63, %v160_v1 }
 0x106   :  { %v622_v3 = vadd.f32 %v418_v0, %v194_v2 }
 0x108   :  { %v428_v4 = vpop.eup %427  ;;  %v366_v5 = vmul.f32 -1.442695, %v622_v3 }
 0x109   :  { %v246_v8 = vadd.f32 1.0, %v428_v4 }
 0x10a   :  { %429 = vpow2.f32 %v366_v5  ;;  %v157_v10 = vpop.f32.mrf.mxu2 }
 0x10b   :  { %431 = vrcp.f32 %v246_v8  ;;  %v163_v14 = vpop.f32.mrf.mxu3  ;;  %v193_v16 = vmul.f32 %v419_v6, %v157_v10  ;;  %v148_v18 = vpop.f32.mrf.mxu0  ;;  %v291_v36 = vand.u32 2147483648, %v246_v8  ;;  %v289_v38 = vand.u32 2147483647, %v246_v8 }
 0x10c   :  { %v195_v17 = vmul.f32 %v421_v7, %v163_v14  ;;  %v190_v20 = vmul.f32 %v423_v9, %v148_v18  ;;  %vm285_vm4 = vweird.f32 %v246_v8 }
 0x10d   :  { %v151_v21 = vpop.f32.mrf.mxu1  ;;  %v649_v22 = vadd.f32 %v420_v11, %v193_v16  ;;  %v292_v42 = vor.u32 1.1754944e-38, %v291_v36  ;;  %vm290_vm6 = vcmp.eq.f32.partialorder %v289_v38, 8.507059e+37 }
 0x10e   :  { %v651_v23 = vadd.f32 %v422_v12, %v195_v17  ;;  %v191_v24 = vmul.f32 %v425_v13, %v151_v21  ;;  %v653_v25 = vadd.f32 %v424_v15, %v190_v20 }
 0x10f   :  { %v365_v27 = vmul.f32 -1.442695, %v649_v22 }
 0x110   :  { %v430_v26 = vpop.eup %429  ;;  %v367_v28 = vmul.f32 -1.442695, %v651_v23  ;;  %v657_v29 = vadd.f32 %v426_v19, %v191_v24  ;;  %v362_v32 = vmul.f32 -1.442695, %v653_v25 }
 0x111   :  { %v432_v30 = vpop.eup %431  ;;  %v248_v31 = vadd.f32 1.0, %v430_v26  ;;  %433 = vpow2.f32 %v365_v27 }
 0x112   :  { %v281_v33 = vmul.f32 %v432_v30, %v246_v8  ;;  %v363_v34 = vmul.f32 -1.442695, %v657_v29  ;;  %vm286_vm3 = vweird.f32 %v432_v30 }
 0x113   :  { %435 = vrcp.f32 %v248_v31  ;;  %vm287_vm5 = vmor %vm285_vm4, %vm286_vm3  ;;  %v321_v53 = vand.u32 2147483648, %v248_v31  ;;  %v319_v57 = vand.u32 2147483647, %v248_v31  ;;  %vm315_vm8 = vweird.f32 %v248_v31 }
 0x114   :  { %v282_v35 = vsub.f32 1.0, %v281_v33  ;;  %437 = vpow2.f32 %v367_v28 }
 0x115   :  { %439 = vpow2.f32 %v362_v32  ;;  %v322_v60 = vor.u32 1.1754944e-38, %v321_v53  ;;  %vm320_vm10 = vcmp.eq.f32.partialorder %v319_v57, 8.507059e+37 }
 0x116   :  { %v283_v37 = vmul.f32 %v432_v30, %v282_v35  ;;  %441 = vpow2.f32 %v363_v34 }
 0x117   :  { %v434_v39 = vpop.eup %433 }
 0x118   :  { %v284_v40 = vadd.f32 %v432_v30, %v283_v37  ;;  %v247_v43 = vadd.f32 1.0, %v434_v39 }
 0x119   :  { %v436_v41 = vpop.eup %435 }
 0x11a   :  { %v438_v44 = vpop.eup %437  ;;  %v288_v45 = vsel %vm287_vm5, %v432_v30, %v284_v40  ;;  %v311_v46 = vmul.f32 %v436_v41, %v248_v31  ;;  %443 = vrcp.f32 %v247_v43  ;;  %vm316_vm7 = vweird.f32 %v436_v41 }
 0x11b   :  { %v440_v47 = vpop.eup %439  ;;  %v293_v48 = vsel %vm290_vm6, %v292_v42, %v288_v45  ;;  %v249_v52 = vadd.f32 1.0, %v438_v44  ;;  %vm317_vm9 = vmor %vm315_vm8, %vm316_vm7  ;;  %v306_v62 = vand.u32 2147483648, %v247_v43  ;;  %vm300_vm11 = vweird.f32 %v247_v43 }
 0x11c   :  { %v442_v49 = vpop.eup %441  ;;  %v342_v50 = vmul.f32 %v293_v48, %v613_v61  ;;  %v312_v51 = vsub.f32 1.0, %v311_v46  ;;  %v662_v54 = vadd.f32 1.0, %v440_v47  ;;  %v304_v61 = vand.u32 2147483647, %v247_v43 }
 0x11d   :  { %v664_v55 = vadd.f32 1.0, %v442_v49  ;;  %445 = vrcp.f32 %v249_v52  ;;  %v307_v8 = vor.u32 1.1754944e-38, %v306_v62  ;;  %vm330_vm13 = vweird.f32 %v249_v52 }
 0x11e   :  { %348 = vst [vmem:[%s714_s4 + $0x10] sm:$0xff] %v342_v50  ;;  %v313_v56 = vmul.f32 %v436_v41, %v312_v51  ;;  %447 = vrcp.f32 %v662_v54  ;;  %vm672_vm12 = vcmp.eq.f32.partialorder %v304_v61, 8.507059e+37  ;;  %v334_v12 = vand.u32 2147483647, %v249_v52 }
 0x11f   :  { %449 = vrcp.f32 %v664_v55  ;;  %v336_v14 = vand.u32 2147483648, %v249_v52  ;;  %vm255_vm15 = vweird.f32 %v662_v54  ;;  %v259_v18 = vand.u32 2147483647, %v662_v54 }
 0x120   :  { %v314_v58 = vadd.f32 %v436_v41, %v313_v56  ;;  %v444_v59 = vpop.eup %443  ;;  %v261_v19 = vand.u32 2147483648, %v662_v54  ;;  %v274_v24 = vand.u32 2147483647, %v664_v55  ;;  %v276_v28 = vand.u32 2147483648, %v664_v55 }
 0x121   :  { %v296_v0 = vmul.f32 %v444_v59, %v247_v43  ;;  %vm301_vm14 = vweird.f32 %v444_v59  ;;  %vm335_vm5 = vcmp.eq.f32.partialorder %v334_v12, 8.507059e+37  ;;  %v337_v34 = vor.u32 1.1754944e-38, %v336_v14 }
 0x122   :  { %v318_v63 = vsel %vm317_vm9, %v436_v41, %v314_v58  ;;  %vm302_vm0 = vmor %vm300_vm11, %vm301_vm14  ;;  %v262_v37 = vor.u32 1.1754944e-38, %v261_v19  ;;  %vm270_vm7 = vweird.f32 %v664_v55  ;;  %vm260_vm8 = vcmp.eq.f32.partialorder %v259_v18, 8.507059e+37 }
 0x123   :  { %v323_v1 = vsel %vm320_vm10, %v322_v60, %v318_v63  ;;  %v446_v2 = vpop.eup %445  ;;  %v297_v5 = vsub.f32 1.0, %v296_v0  ;;  %vm275_vm10 = vcmp.eq.f32.partialorder %v274_v24, 8.507059e+37 }
 0x124   :  { %v344_v4 = vmul.f32 %v323_v1, %v622_v3  ;;  %v448_v6 = vpop.eup %447  ;;  %v326_v9 = vmul.f32 %v446_v2, %v249_v52  ;;  %vm331_vm1 = vweird.f32 %v446_v2 }
 0x125   :  { %v450_v10 = vpop.eup %449  ;;  %v298_v11 = vmul.f32 %v444_v59, %v297_v5  ;;  %v251_v3 = vmul.f32 %v448_v6, %v662_v54  ;;  %vm256_vm2 = vweird.f32 %v448_v6  ;;  %vm332_vm4 = vmor %vm330_vm13, %vm331_vm1 }
 0x126   :  { %350 = vst [vmem:[%s714_s4 + $0x20] sm:$0xff] %v344_v4  ;;  %v327_v13 = vsub.f32 1.0, %v326_v9  ;;  %v266_v15 = vmul.f32 %v450_v10, %v664_v55  ;;  %vm271_vm3 = vweird.f32 %v450_v10  ;;  %vm257_vm6 = vmor %vm255_vm15, %vm256_vm2 }
 0x127   :  { %v299_v16 = vadd.f32 %v444_v59, %v298_v11  ;;  %v252_v17 = vsub.f32 1.0, %v251_v3  ;;  %vm272_vm9 = vmor %vm270_vm7, %vm271_vm3 }
 0x128   :  { %v328_v20 = vmul.f32 %v446_v2, %v327_v13  ;;  %v267_v21 = vsub.f32 1.0, %v266_v15 }
 0x129   :  { %v303_v26 = vsel %vm302_vm0, %v444_v59, %v299_v16  ;;  %v253_v27 = vmul.f32 %v448_v6, %v252_v17 }
 0x12a   :  { %v308_v30 = vsel %vm672_vm12, %v307_v8, %v303_v26  ;;  %v329_v31 = vadd.f32 %v446_v2, %v328_v20  ;;  %v268_v32 = vmul.f32 %v450_v10, %v267_v21 }
 0x12b   :  { %v343_v33 = vmul.f32 %v308_v30, %v649_v22  ;;  %v254_v35 = vadd.f32 %v448_v6, %v253_v27  ;;  %v277_v22 = vor.u32 1.1754944e-38, %v276_v28 }
 0x12c   :  { %v333_v36 = vsel %vm332_vm4, %v446_v2, %v329_v31  ;;  %v269_v38 = vadd.f32 %v450_v10, %v268_v32 }
 0x12d   :  { %349 = vst [vmem:[%s714_s4 + $0x18] sm:$0xff] %v343_v33  ;;  %v338_v39 = vsel %vm335_vm5, %v337_v34, %v333_v36  ;;  %v258_v40 = vsel %vm257_vm6, %v448_v6, %v254_v35 }
 0x12e   :  { %v345_v41 = vmul.f32 %v338_v39, %v651_v23  ;;  %v263_v42 = vsel %vm260_vm8, %v262_v37, %v258_v40  ;;  %v273_v43 = vsel %vm272_vm9, %v450_v10, %v269_v38 }
 0x12f   :  { %v340_v44 = vmul.f32 %v263_v42, %v653_v25  ;;  %v278_v45 = vsel %vm275_vm10, %v277_v22, %v273_v43 }
 0x130   :  { %351 = vst [vmem:[%s714_s4 + $0x28] sm:$0xff] %v345_v41  ;;  %v341_v46 = vmul.f32 %v278_v45, %v657_v29 }
 0x131   :  { %346 = vst [vmem:[%s714_s4] sm:$0xff] %v340_v44 }
 0x132   :  { %347 = vst [vmem:[%s714_s4 + $0x8] sm:$0xff] %v341_v46 }

</bundles_post_ra>
